<compile_context>
chip_gen: v7x
topology: tpu7x:2x2x1
jax: 0.10.0
libtpu: 0.0.40
codegen_flags: <defaults>
</compile_context>

<pallas_src>
import numpy as np
import jax
import jax.numpy as jnp
from jax import lax
from jax.experimental import pallas as pl
from jax.experimental.pallas import tpu as pltpu

KERNEL = 3     # AvgPool2d kernel size
STRIDE = 2     # stride arg of AvgPoolPad.__init__
PADDING = 1    # padding arg of AvgPoolPad.__init__


def _avgpool_kernel(x_ref, pw_ref, pht_ref, inv_ref, o_ref):
    # x_ref:   (ncb, H, W)   input planes (sublane axis = H, lane axis = W)
    # pw_ref:  (W, Wo)       0/1 pooling taps along W (left/right pad handled here)
    # pht_ref: (Ho, H)       0/1 pooling taps along H, transposed (top/bottom pad)
    # inv_ref: (Ho, Wo)      1 / valid-count  (count_include_pad=False)
    # o_ref:   (ncb, Ho, Wo)
    ncb = x_ref.shape[0]
    pw = pw_ref[...]          # input dtype (0/1 -> exact in bf16 too)
    pht = pht_ref[...]        # f32
    inv = inv_ref[...]        # f32

    for n in range(ncb):      # static trip count; per-plane working set is small
        xn = x_ref[n]                                               # (H, W)
        # W-axis 3-tap + stride reduction on the MXU (lane axis -> matmul).
        y = jnp.dot(xn, pw, preferred_element_type=jnp.float32)     # (H, Wo)
        # H-axis 3-tap + stride reduction, also on the MXU.
        s = jnp.dot(pht, y, preferred_element_type=jnp.float32)     # (Ho, Wo)
        o_ref[n] = (s * inv).astype(o_ref.dtype)


def _pool_taps(size, out_size, stride, padding, ksize):
    """0/1 matrix M of shape (size, out_size): M[i, o] = 1 iff input index i
    lies inside pooling window o (windows may hang over the zero padding)."""
    starts = np.arange(out_size) * stride - padding
    idx = np.arange(size)[:, None]
    return ((idx >= starts[None, :]) &
            (idx < starts[None, :] + ksize)).astype(np.float32)


def avg_pool_pad(x_nchw, stride=STRIDE, padding=PADDING):
    """Pallas implementation of AvgPoolPad.forward (NCHW in, NCHW out)."""
    n, c, h, w = x_nchw.shape
    ho = (h + 2 * padding - KERNEL) // stride + 1
    wo = (w + 2 * padding - KERNEL) // stride + 1
    nc = n * c
    dtype = x_nchw.dtype

    # Constant pooling-tap matrices + exact reciprocal valid counts (static data).
    mh = _pool_taps(h, ho, stride, padding, KERNEL)        # (H, Ho)
    mw = _pool_taps(w, wo, stride, padding, KERNEL)        # (W, Wo)
    cnt = mh.sum(0)[:, None] * mw.sum(0)[None, :]          # (Ho, Wo): 4 / 6 / 9
    pw = jnp.asarray(mw, dtype)                            # 0/1 in input dtype
    pht = jnp.asarray(mh.T, jnp.float32)                   # (Ho, H)
    inv = jnp.asarray(1.0 / cnt, jnp.float32)              # (Ho, Wo)

    # NCHW -> (N*C, H, W): pure reshape, no data movement, no transpose pass.
    x = x_nchw.reshape(nc, h, w)

    # Block size along N*C from actual per-plane bytes against a ~4 MiB in+out
    # budget (=> ~10 MiB double-buffered, well inside every generation's VMEM),
    # while guaranteeing several grid steps (v7x megacore + pipeline depth).
    itemsize = x_nchw.dtype.itemsize
    plane_bytes = (h * w + ho * wo) * itemsize
    target_bytes = 4 * 1024 * 1024
    cap = max(1, target_bytes // plane_bytes)
    cap = min(cap, max(1, nc // min(4, nc)))   # aim for >= 4 grid steps if nc >= 4
    ncb = 1
    d = 1
    while d * d <= nc:                          # largest divisor of nc that fits
        if nc % d == 0:
            for cand in (d, nc // d):
                if cand <= cap:
                    ncb = max(ncb, cand)
        d += 1

    grid = (nc // ncb,)

    out = pl.pallas_call(
        _avgpool_kernel,
        out_shape=jax.ShapeDtypeStruct((nc, ho, wo), dtype),
        grid=grid,
        in_specs=[
            pl.BlockSpec((ncb, h, w), lambda i: (i, 0, 0)),
            pl.BlockSpec((w, wo), lambda i: (0, 0)),    # resident across steps
            pl.BlockSpec((ho, h), lambda i: (0, 0)),    # resident across steps
            pl.BlockSpec((ho, wo), lambda i: (0, 0)),   # resident across steps
        ],
        out_specs=pl.BlockSpec((ncb, ho, wo), lambda i: (i, 0, 0)),
        compiler_params=pltpu.CompilerParams(
            dimension_semantics=("parallel",),
            vmem_limit_bytes=32 * 1024 * 1024,
        ),
    )(x, pw, pht, inv)

    # (N*C, Ho, Wo) -> NCHW: pure reshape, free.
    return out.reshape(n, c, ho, wo)


def _reference_avg_pool(x_nchw, stride=STRIDE, padding=PADDING):
    """Pure-JAX reference: avg_pool2d(3, stride, padding, count_include_pad=False)."""
    xp = jnp.pad(
        x_nchw, ((0, 0), (0, 0), (padding, padding), (padding, padding)))
    ones = jnp.pad(
        jnp.ones(x_nchw.shape[2:], x_nchw.dtype),
        ((padding, padding), (padding, padding)))[None, None]
    win = (1, 1, KERNEL, KERNEL)
    strides = (1, 1, stride, stride)
    s = lax.reduce_window(xp, 0.0, lax.add, win, strides, "VALID")
    cnt = lax.reduce_window(ones, 0.0, lax.add, win, strides, "VALID")
    return s / cnt


if __name__ == "__main__":
    key = jax.random.PRNGKey(0)
    x = jax.random.normal(key, (2, 4, 16, 16), dtype=jnp.float32)  # NCHW

    out = jax.block_until_ready(avg_pool_pad(x))
    ref = _reference_avg_pool(x)

    assert out.shape == ref.shape == (2, 4, 8, 8), out.shape
    assert jnp.allclose(out, ref, atol=1e-5, rtol=1e-5), "mismatch vs reference"

    print("KERNEL_OK")
</pallas_src>

<mosaic_0001>
module attributes {stable_mosaic.version = 11 : i64} {
  func.func @_avgpool_kernel(%arg0: i32, %arg1: memref<2x16x16xf32, #tpu.memory_space<vmem>>, %arg2: memref<16x8xf32, #tpu.memory_space<vmem>>, %arg3: memref<8x16xf32, #tpu.memory_space<vmem>>, %arg4: memref<8x8xf32, #tpu.memory_space<vmem>>, %arg5: memref<2x8x8xf32, #tpu.memory_space<vmem>>) attributes {dimension_semantics = [#tpu.dimension_semantics<parallel>], iteration_bounds = array<i64: 4>, scalar_prefetch = 0 : i64, scratch_operands = 0 : i64, tpu.core_type = #tpu.core_type<tc>, window_params = [{transform_indices = @transform_0, window_bounds = array<i64: 2, 16, 16>}, {pipeline_mode = #tpu.pipeline_mode<synchronous>, transform_indices = @transform_1, window_bounds = array<i64: 16, 8>}, {pipeline_mode = #tpu.pipeline_mode<synchronous>, transform_indices = @transform_2, window_bounds = array<i64: 8, 16>}, {pipeline_mode = #tpu.pipeline_mode<synchronous>, transform_indices = @transform_3, window_bounds = array<i64: 8, 8>}, {transform_indices = @transform_4, window_bounds = array<i64: 2, 8, 8>}]} {
    %c0 = arith.constant 0 : index
    %c0_0 = arith.constant 0 : index
    %0 = vector.load %arg2[%c0, %c0_0] : memref<16x8xf32, #tpu.memory_space<vmem>>, vector<16x8xf32>
    %c0_1 = arith.constant 0 : index
    %c0_2 = arith.constant 0 : index
    %1 = vector.load %arg3[%c0_1, %c0_2] : memref<8x16xf32, #tpu.memory_space<vmem>>, vector<8x16xf32>
    %c0_3 = arith.constant 0 : index
    %c0_4 = arith.constant 0 : index
    %2 = vector.load %arg4[%c0_3, %c0_4] : memref<8x8xf32, #tpu.memory_space<vmem>>, vector<8x8xf32>
    %c0_5 = arith.constant 0 : index
    %c0_6 = arith.constant 0 : index
    %c0_7 = arith.constant 0 : index
    %3 = vector.load %arg1[%c0_5, %c0_6, %c0_7] : memref<2x16x16xf32, #tpu.memory_space<vmem>>, vector<1x16x16xf32>
    %4 = vector.shape_cast %3 : vector<1x16x16xf32> to vector<16x16xf32>
    %cst = arith.constant dense<0.000000e+00> : vector<16x8xf32>
    %5 = tpu.matmul %4, %0, %cst {dimension_numbers = #tpu.dot_dimension_numbers<[1], [0], [0], [1], [0, 0, 1, 1], [], []>} : vector<16x16xf32>, vector<16x8xf32>, vector<16x8xf32> -> vector<16x8xf32>
    %cst_8 = arith.constant dense<0.000000e+00> : vector<8x8xf32>
    %6 = tpu.matmul %1, %5, %cst_8 {dimension_numbers = #tpu.dot_dimension_numbers<[1], [0], [0], [1], [0, 0, 1, 1], [], []>} : vector<8x16xf32>, vector<16x8xf32>, vector<8x8xf32> -> vector<8x8xf32>
    %7 = arith.mulf %6, %2 : vector<8x8xf32>
    %c0_9 = arith.constant 0 : index
    %c0_10 = arith.constant 0 : index
    %c0_11 = arith.constant 0 : index
    %8 = vector.load %arg5[%c0_9, %c0_10, %c0_11] : memref<2x8x8xf32, #tpu.memory_space<vmem>>, vector<1x8x8xf32>
    %9 = vector.shape_cast %8 : vector<1x8x8xf32> to vector<8x8xf32>
    %10 = vector.shape_cast %7 : vector<8x8xf32> to vector<1x8x8xf32>
    tpu.vector_store %arg5[%c0_9, %c0_10, %c0_11], %10 {strides = array<i32>} : memref<2x8x8xf32, #tpu.memory_space<vmem>>, vector<1x8x8xf32>,
    %c1 = arith.constant 1 : index
    %c0_12 = arith.constant 0 : index
    %c0_13 = arith.constant 0 : index
    %11 = vector.load %arg1[%c1, %c0_12, %c0_13] : memref<2x16x16xf32, #tpu.memory_space<vmem>>, vector<1x16x16xf32>
    %12 = vector.shape_cast %11 : vector<1x16x16xf32> to vector<16x16xf32>
    %cst_14 = arith.constant dense<0.000000e+00> : vector<16x8xf32>
    %13 = tpu.matmul %12, %0, %cst_14 {dimension_numbers = #tpu.dot_dimension_numbers<[1], [0], [0], [1], [0, 0, 1, 1], [], []>} : vector<16x16xf32>, vector<16x8xf32>, vector<16x8xf32> -> vector<16x8xf32>
    %cst_15 = arith.constant dense<0.000000e+00> : vector<8x8xf32>
    %14 = tpu.matmul %1, %13, %cst_15 {dimension_numbers = #tpu.dot_dimension_numbers<[1], [0], [0], [1], [0, 0, 1, 1], [], []>} : vector<8x16xf32>, vector<16x8xf32>, vector<8x8xf32> -> vector<8x8xf32>
    %15 = arith.mulf %14, %2 : vector<8x8xf32>
    %c1_16 = arith.constant 1 : index
    %c0_17 = arith.constant 0 : index
    %c0_18 = arith.constant 0 : index
    %16 = vector.load %arg5[%c1_16, %c0_17, %c0_18] : memref<2x8x8xf32, #tpu.memory_space<vmem>>, vector<1x8x8xf32>
    %17 = vector.shape_cast %16 : vector<1x8x8xf32> to vector<8x8xf32>
    %18 = vector.shape_cast %15 : vector<8x8xf32> to vector<1x8x8xf32>
    tpu.vector_store %arg5[%c1_16, %c0_17, %c0_18], %18 {strides = array<i32>} : memref<2x8x8xf32, #tpu.memory_space<vmem>>, vector<1x8x8xf32>,
    return
  }
  func.func @transform_0(%arg0: i32) -> (i32, i32, i32) {
    %c0_i32 = arith.constant 0 : i32
    %c0_i32_0 = arith.constant 0 : i32
    %c0_i32_1 = arith.constant 0 : i32
    return %arg0, %c0_i32, %c0_i32_0 : i32, i32, i32
  }
  func.func @transform_1(%arg0: i32) -> (i32, i32) {
    %c0_i32 = arith.constant 0 : i32
    %c0_i32_0 = arith.constant 0 : i32
    %c0_i32_1 = arith.constant 0 : i32
    return %c0_i32, %c0_i32_0 : i32, i32
  }
  func.func @transform_2(%arg0: i32) -> (i32, i32) {
    %c0_i32 = arith.constant 0 : i32
    %c0_i32_0 = arith.constant 0 : i32
    %c0_i32_1 = arith.constant 0 : i32
    return %c0_i32, %c0_i32_0 : i32, i32
  }
  func.func @transform_3(%arg0: i32) -> (i32, i32) {
    %c0_i32 = arith.constant 0 : i32
    %c0_i32_0 = arith.constant 0 : i32
    %c0_i32_1 = arith.constant 0 : i32
    return %c0_i32, %c0_i32_0 : i32, i32
  }
  func.func @transform_4(%arg0: i32) -> (i32, i32, i32) {
    %c0_i32 = arith.constant 0 : i32
    %c0_i32_0 = arith.constant 0 : i32
    %c0_i32_1 = arith.constant 0 : i32
    return %arg0, %c0_i32, %c0_i32_0 : i32, i32, i32
  }
}

</mosaic_0001>

<bundles_post_ra>
// kernel: tpu_custom_call.1
= control target key start
LH: loop header
LB: loop body
LE: loop exit
PB: predicated region body
PF: predicated region fallthrough
CT: control target
= control target key end

     0   :  { %9 = vsyncpa [#allocation3], 0  ;;  %s1074_s0 = inlined_call_operand.hbm [shape: f32[8,16,16], index: 0, kind: input, shape index: {}]   ;;  %s1075_s1 = inlined_call_operand.vmem [shape: f32[16,8], index: 1, kind: input, shape index: {}]   ;;  %s1076_s2 = inlined_call_operand.vmem [shape: f32[8,16], index: 2, kind: input, shape index: {}]   ;;  %s1077_s3 = inlined_call_operand.vmem [shape: f32[8,8], index: 3, kind: input, shape index: {}]   ;;  %s1078_s4 = inlined_call_operand.hbm [shape: f32[8,8,8], index: 4, kind: output, shape index: {}]  }
   0x1   :  { %11 = vsyncpa [#allocation3 + $0x1], 0 }
   0x2   :  { %12 = vsyncpa [#allocation4], 0 }
   0x3   :  { %14 = vsyncpa [#allocation4 + $0x1], 0  ;;  %s895_s15 = smov 0   ;;  %s897_s16 = smov 0  }
   0x4   :  { %s899_s17 = smov 0   ;;  %s901_s18 = smov 0  }
   0x5 LB: > { %s916_s19 = sadd.s32 4294967295, %s859_s18   ;;  %s627_s20 = sadd.s32 4294967294, %s859_s18   ;;  %s859_s18 = sphi %s901_s18, %s1090_s18   ;;  %s855_s17 = sphi %s899_s17, %s1089_s17   ;;  %s851_s16 = sphi %s897_s16, %s1088_s16   ;;  %s847_s15 = sphi %s895_s15, %s1087_s15  }
   0x6   : > { %s920_s21 = sadd.s32 1, %s859_s18   ;;  %s27_s22 = sadd.s32 1, %s855_s17 }
   0x7   : > { %s24_s23 = ssub.s32 %s859_s18, %s920_s21  ;;  %p34_p0 = scmp.ne.s32.totalorder %s855_s17, %s851_s16 }
   0x8   : > { %p25_p1 = scmp.eq.s32.totalorder %s24_s23, 0  ;;  %p35_p2 = scmp.eq.s32.totalorder %s859_s18, 0 }
   0x9   : > { %p40_p3 = scmp.ne.s32.totalorder %s851_s16, %s847_s15  ;;  %p41_p4 = scmp.eq.s32.totalorder %s916_s19, 0 }
   0xa   : > { %s932_s24 = scalar_select %p25_p1, %s855_s17, %s27_s22  }
   0xb   : > { %p934_p5 = por %p35_p2, %p34_p0  ;;  %p938_p6 = por %p41_p4, %p40_p3 }
   0xc   : > { %p127_p7 = scmp.eq.s32.totalorder %s916_s19, 3  ;;  %p133_p8 = scmp.eq.s32.totalorder %s627_s20, 3 }
   0xd   : > { %p722_p9 = scmp.lt.s32.totalorder %s859_s18, 4  ;;  %s162_s29 = sand.u32 1, %s855_s17  }
   0xe   : > { %p944_p10 = por %p127_p7, %p34_p0  ;;  %p948_p11 = por %p133_p8, %p40_p3 }
   0xf   : > { %s652_s30 = sshll.u32 %s859_s18, 9  ;;  %s630_s5 = sshll.u32 %s162_s29, 5 }
  0x10   : > { %s1082_s27 = scalar_select %p944_p10, 1, 0 }
  0x11   : > { %s1083_s28 = scalar_select %p948_p11, 1, 0 }
  0x12   : > { %s957_s8 = scalar_lea.hbm %s1074_s0, %s652_s30  ;;  %s166_s9 = scalar_lea.vmem [#allocation2], %s630_s5 }
  0x13   : > { %s174_s10 = sshll.u32 %s166_s9, 4  ;;  %p961_p12 = pnand %p722_p9, %p934_p5  ;;  %s965_s10 = int_to_ptr.vmem [resolvable:$true] %s174_s10 }
  0x14   : > { %s967_s12 = scalar_lea.sflag [#allocation3], %s162_s29  ;;  %s763_s13 = scalar_lea.hbm %s957_s8, 512 }
  0x15   : > { %p764_p13 = scmp.ne.s32.totalorder %s957_s8, %s763_s13  ;;  %p765_p0 = pneg %p961_p12 }
  0x16   : > { %s768_s22 = scalar_lea.hbm %s1074_s0, 2048  ;;  %p769_p3 = scmp.lt.u32.totalorder %s957_s8, %s1074_s0 }
  0x17   : > { %p766_p1 = pnand %p765_p0, %p764_p13  ;;  %p770_p4 = scmp.lt.u32.totalorder %s768_s22, %s763_s13 }
  0x18   : > { %p772_p7 = scmp.lt.u32.totalorder %s763_s13, %s957_s8 }
  0x19   : > { %p767_p2 = pneg %p766_p1  ;;  %p771_p5 = por %p770_p4, %p769_p3 }
  0x1b   : > { %p773_p8 = por %p772_p7, %p771_p5 }
  0x1d   : > { %p774_p9 = pnand %p773_p8, %p767_p2 }
  0x1f   : > { %777 = shalt.err (!%p774_p9)
}
  0x20   : > { %s778_s29 = scalar_lea.vmem %s965_s10, 512  ;;  %s861_s30 = smov [#allocation2]  }
  0x21   : > { %p779_p13 = scmp.ne.s32.totalorder %s965_s10, %s778_s29  ;;  %s783_s5 = sshll.u32 %s861_s30, 4  ;;  %s784_s5 = int_to_ptr.vmem [resolvable:$false] %s783_s5 }
  0x22   : > { %s785_s6 = scalar_lea.vmem %s784_s5, 1024  ;;  %p786_p10 = scmp.lt.s32.totalorder %s965_s10, %s784_s5 }
  0x23   : > { %p781_p1 = pnand %p779_p13, %p765_p0  ;;  %p787_p3 = scmp.lt.s32.totalorder %s785_s6, %s778_s29 }
  0x25   : > { %p782_p11 = pneg %p781_p1  ;;  %p788_p4 = por %p787_p3, %p786_p10 }
  0x27   : > { %p789_p5 = pnand %p788_p4, %p782_p11 }
  0x29   : > { %792 = shalt.err (!%p789_p5)
}
  0x2a   : > { %s862_s7 = smov 128   ;;  %s863_s9 = smov 8  }
  0x2b   : > { %717 = dma.hbm_to_vmem [thread:$0]  (!%p961_p12), %s957_s8, 512, %s965_s10, %s967_s12, %s862_s7, %s862_s7, %s863_s9  }
  0x2c   : > { %p634_p0 = scmp.ge.s32.totalorder %s859_s18, 1  ;;  %p182_p2 = scmp.lt.s32.totalorder %s859_s18, 5 }
  0x2e   : > { %p183_p7 = pnand %p634_p0, %p182_p2 }
  0x2f   : > { %s998_s13 = sand.u32 (!%p183_p7), 1, %s851_s16  }
  0x30   : > { %186 = sbr.rel (%p183_p7) target bundleno = 514 (0x202), region = 36  ;;  %s635_s14 = sshll.u32 (!%p183_p7), %s998_s13, 5 }
  0x31   : > { %s189_s20 = scalar_lea.sflag (!%p183_p7), [#allocation3], %s998_s13  ;;  %s192_s22 = scalar_lea.vmem (!%p183_p7), [#allocation2], %s635_s14 }
  0x37   : > { %838 = dma.done.wait (%p938_p6), %s189_s20, 512  }
  0x38   : > { %840 = vsyncadd (%p938_p6), %s189_s20, 4294966784  ;;  %vm225_vm0 = vcmask 130048   ;;  %v219_v0 = vld [vmem:[%s1075_s1] sm:$0xff]  ;;  %v220_v1 = vld [vmem:[%s1075_s1 + $0x8] sm:$0xff]  ;;  %v864_v7 = vmov 0.0|0.0   ;;  %vm865_vm1 = vmmov 0  }
  0x39   : > { %v223_v2 = vld [vmem:[%s192_s22] sm:$0xff]  ;;  %v696_v3 = vpack.c.bf16 %v220_v1, %v219_v0  ;;  %v224_v4 = vld [vmem:[%s192_s22 + $0x8] sm:$0xff]  ;;  %v640_v5 = vld [vmem:[%s192_s22 + $0x10] sm:$0xff]  ;;  %700 = vmatprep.subr.bf16.mxu1 %v864_v7  ;;  %v866_v8 = vmov 0.0   ;;  %s636_s25 = sshll.u32 %s998_s13, 4  ;;  %vm381_vm2 = vcmask 64512  }
  0x3a   : > { %672 = vmatprep.mubr.msk.f32.mxu0 %vm225_vm0, %v223_v2  ;;  %v641_v6 = vld [vmem:[%s192_s22 + $0x18] sm:$0xff]  ;;  %679 = vmatprep.mubr.msk.f32.mxu1 %vm865_vm1, %v866_v8  ;;  %v221_v13 = vld [vmem:[%s1076_s2] sm:$0xff]  ;;  %s216_s5 = scalar_lea.vmem [#allocation5], %s636_s25  ;;  %s653_s7 = sshll.u32 %s916_s19, 8 }
  0x3b   : > { %697 = vmatprep.subr.bf16.mxu0 %v696_v3  ;;  %v222_v16 = vld [vmem:[%s1077_s3] sm:$0xff]  ;;  %s554_s6 = sshll.u32 %s216_s5, 4  ;;  %s1031_s20 = scalar_lea.hbm %s1078_s4, %s653_s7  ;;  %s1026_s6 = int_to_ptr.vmem [resolvable:$true] %s554_s6 }
  0x3c   : > { %699 = vmatpush3.bf16.msra.mxu0 %v696_v3  ;;  %s541_s22 = scalar_lea.sflag [#allocation4], %s998_s13  ;;  %s793_s8 = scalar_lea.vmem %s1026_s6, 256 }
  0x3d   : > { %704 = vmatprep.subr.bf16.mxu0 %v696_v3  ;;  %p794_p6 = scmp.ne.s32.totalorder %s1026_s6, %s793_s8  ;;  %p1085_p10 = scmp.ne.s32.totalorder %s1082_s27, 0 }
  0x3e   : > { %s867_s19 = smov [#allocation5]  }
  0x3f   : > { %673 = vmatmul.mubr.msk.f32.vlgmr.msra.gmra.mrb[0].mxu0 %vm225_vm0, %v224_v4  ;;  %p795_p11 = pnand %p794_p6, %p1085_p10  ;;  %s797_s10 = sshll.u32 %s867_s19, 4  ;;  %s798_s10 = int_to_ptr.vmem [resolvable:$false] %s797_s10 }
  0x40   : > { %706 = vmatpush3.bf16.msra.mxu0 %v696_v3  ;;  %686 = vmatprep.mubr.msk.f32.mxu0 %vm225_vm0, %v640_v5  ;;  %s799_s11 = scalar_lea.vmem %s798_s10, 512  ;;  %p800_p8 = scmp.lt.s32.totalorder %s1026_s6, %s798_s10 }
  0x41   : > { %p796_p12 = pneg %p795_p11  ;;  %p801_p9 = scmp.lt.s32.totalorder %s799_s11, %s793_s8 }
  0x43   : > { %687 = vmatmul.mubr.msk.f32.vlgmr.msra.gmra.mrb[2].mxu0 %vm225_vm0, %v641_v6  ;;  %p802_p13 = por %p801_p9, %p800_p8 }
  0x45   : > { %p803_p1 = pnand %p802_p13, %p796_p12 }
 0x112   : > { %v674_v9 = vpop.f32.mrb[0].mxu0 }
 0x113   : > { %v298_v10 = vpop.f32.mrb[1].mxu0 }
 0x114   : > { %v701_v11 = vpack.c.bf16 %v674_v9, %v298_v10 }
 0x116   : > { %702 = vmatpush3.bf16.msra.mxu1 %v701_v11  ;;  %v688_v12 = vpop.f32.mrb[2].mxu0 }
 0x117   : > { %v458_v14 = vpop.f32.mrb[3].mxu0  ;;  %707 = vmatprep.subr.bf16.mxu1 %v864_v7 }
 0x118   : > { %v708_v15 = vpack.c.bf16 %v688_v12, %v458_v14 }
 0x119   : > { %680 = vmatmul.mubr.msk.f32.vlgmr.msra.gmra.mrb[0].mxu1 %vm225_vm0, %v221_v13 }
 0x11a   : > { %709 = vmatpush3.bf16.msra.mxu1 %v708_v15  ;;  %693 = vmatprep.mubr.msk.f32.mxu1 %vm865_vm1, %v866_v8 }
 0x11d   : > { %694 = vmatmul.mubr.msk.f32.vlgmr.msra.gmra.mrb[2].mxu1 %vm225_vm0, %v221_v13 }
 0x1ec   : > { %v376_v17 = vpop.f32.mrb[0].mxu1 }
 0x1ed   : > { %v380_v18 = vmul.f32 %v376_v17, %v222_v16  ;;  %v681_v19 = vpop.f32.mrb[1].mxu1 }
 0x1ef   : > { %382 = vst.msk [vmem:[%s216_s5] sm:$0xff] %vm381_vm2, %v380_v18 }
 0x1f0   : > { %v533_v20 = vpop.f32.mrb[2].mxu1 }
 0x1f1   : > { %v537_v21 = vmul.f32 %v533_v20, %v222_v16  ;;  %v695_v22 = vpop.f32.mrb[3].mxu1 }
 0x1f3   : > { %645 = vst.msk [vmem:[%s216_s5 + $0x8] sm:$0xff] %vm381_vm2, %v537_v21 }
 0x1f4   : > { %806 = shalt.err (!%p803_p1)
}
 0x1f5   : > { %s807_s12 = scalar_lea.hbm %s1031_s20, 256  ;;  %s811_s25 = scalar_lea.hbm %s1078_s4, 1024 }
 0x1f6   : > { %p808_p3 = scmp.ne.s32.totalorder %s1031_s20, %s807_s12  ;;  %p812_p0 = scmp.lt.u32.totalorder %s1031_s20, %s1078_s4 }
 0x1f7   : > { %p813_p2 = scmp.lt.u32.totalorder %s811_s25, %s807_s12  ;;  %p815_p6 = scmp.lt.u32.totalorder %s807_s12, %s1031_s20 }
 0x1f8   : > { %p809_p4 = pnand %p808_p3, %p1085_p10 }
 0x1f9   : > { %p814_p7 = por %p813_p2, %p812_p0 }
 0x1fa   : > { %p810_p5 = pneg %p809_p4 }
 0x1fb   : > { %p816_p11 = por %p815_p6, %p814_p7 }
 0x1fd   : > { %p817_p12 = pnand %p816_p11, %p810_p5 }
 0x1ff   : > { %820 = shalt.err (!%p817_p12)
}
 0x200   : > { %s868_s5 = smov 128   ;;  %s869_s7 = smov 8  }
 0x201   : > { %712 = dma.vmem_to_hbm [thread:$0]  (%p1085_p10), %s1026_s6, 256, %s1031_s20, %s541_s22, %s868_s5, %s868_s5, %s869_s7  }
 0x202 PF: > { %p723_p8 = scmp.ge.s32.totalorder %s859_s18, 2  ;;  %s569_s9 = sand.u32 1, %s847_s15  }
 0x203   : > { %p1086_p9 = scmp.ne.s32.totalorder %s1083_s28, 0  ;;  %s570_s14 = scalar_lea.sflag [#allocation4], %s569_s9 }
 0x205   : > { %p719_p13 = pnand %p723_p8, %p1086_p9 }
 0x207   : > { %842 = dma.done.wait (!%p719_p13), %s570_s14, 256  }
 0x208   : > { %844 = vsyncadd (!%p719_p13), %s570_s14, 4294967040  ;;  %p17_p1 = scmp.ge.s32.totalorder %s920_s21, 6   ;;  %s1087_s15 = smov %s851_s16 }
 0x209   : > { %s1088_s16 = smov %s855_s17  ;;  %s1089_s17 = smov %s932_s24 }
 0x20a   : > { %s1090_s18 = smov %s920_s21  ;;  %19 = sbr.rel (!%p17_p1) target bundleno = 5 (0x5), region = 83 }
 0x211   :  { %575 = vsyncpa [#allocation3], 1 }
 0x212   :  { %577 = vsyncpa [#allocation3 + $0x1], 1 }
 0x213   :  { %578 = vsyncpa [#allocation4], 1 }
 0x214   :  { %580 = vsyncpa [#allocation4 + $0x1], 1 }

</bundles_post_ra>
